<compile_context>
chip_gen: v6e
topology: v6e:2x2x1
jax: 0.10.0
libtpu: 0.0.40
codegen_flags: <defaults>
</compile_context>

<pallas_src>
import functools

import jax
import jax.numpy as jnp
from jax import lax
from jax.experimental import pallas as pl
from jax.experimental.pallas import tpu as pltpu


def _dwconv_kernel(x_ref, top_ref, bot_ref, w_ref, b_ref, o_ref, ext_ref, *, W):
    # x_ref  : (1, TB, C)  current row tile, tokens in row-major (h, w) order
    # top_ref: (1, W, C)   image row (rt*TH - 1), clamped; zeroed here at rt == 0
    # bot_ref: (1, W, C)   image row ((rt+1)*TH), clamped; zeroed here at last rt
    # w_ref  : (9, C)      depthwise taps, k = 3*di + dj
    # b_ref  : (1, C)      bias
    # o_ref  : (1, TB, C)  output row tile
    # ext_ref: (TB + 2*W + 2, C) f32 scratch: [pad1 | top row | tile | bot row | pad1]
    rt = pl.program_id(1)
    n_rt = pl.num_programs(1)
    TB = o_ref.shape[1]
    C = o_ref.shape[2]
    f32 = jnp.float32

    # Vertical halo rows; zero them at the image boundary (this replaces the
    # top/bottom part of the old wrapper-side jnp.pad).
    top = jnp.where(rt == 0, 0.0, top_ref[0].astype(f32))
    bot = jnp.where(rt == n_rt - 1, 0.0, bot_ref[0].astype(f32))

    # Assemble the vertically extended window in VMEM scratch.
    zrow = jnp.zeros((1, C), f32)
    ext_ref[0:1, :] = zrow
    ext_ref[1:1 + W, :] = top
    ext_ref[1 + W:1 + W + TB, :] = x_ref[0].astype(f32)
    ext_ref[1 + W + TB:1 + 2 * W + TB, :] = bot
    ext_ref[1 + 2 * W + TB:2 + 2 * W + TB, :] = zrow

    # Column masks: the 1-D token-shift trick wraps across image rows for the
    # dj=0 / dj=2 taps; those positions are exactly the left/right zero padding
    # of the conv and are masked out here (replaces the left/right jnp.pad).
    col = lax.broadcasted_iota(jnp.int32, (TB, 1), 0) % W
    not_left = col != 0
    not_right = col != (W - 1)

    # patch(di, dj)[t] = ext[t + di*W + dj]; tap weight is w_ref[3*di + dj].
    # Group by dj (3 partial sums) -> small live set, one mask per group.
    def col_sum(dj):
        acc = ext_ref[dj:dj + TB, :] * w_ref[dj:dj + 1, :].astype(f32)
        acc = acc + ext_ref[W + dj:W + dj + TB, :] * w_ref[3 + dj:4 + dj, :].astype(f32)
        acc = acc + ext_ref[2 * W + dj:2 * W + dj + TB, :] * w_ref[6 + dj:7 + dj, :].astype(f32)
        return acc

    acc = jnp.where(not_left, col_sum(0), 0.0)
    acc = acc + col_sum(1)
    acc = acc + jnp.where(not_right, col_sum(2), 0.0)
    acc = acc + b_ref[...].astype(f32)

    o_ref[0] = acc.astype(o_ref.dtype)


def _pick_row_tile(H, W, C, itemsize, target_bytes=1 << 20):
    """Largest divisor of H whose (TH*W*C) tile stays under ~1 MiB; prefer >=2 tiles."""
    th = 1
    for cand in range(1, H + 1):
        if H % cand == 0 and cand * W * C * itemsize <= target_bytes:
            th = cand
    if th == H and H > 1:  # prefer at least 2 row tiles for pipeline depth
        for cand in range(H // 2, 0, -1):
            if H % cand == 0:
                th = cand
                break
    return th


def dwconv_forward(x, H, W, weight, bias, *, row_tile=None):
    """x: (B, N, C) with N == H*W or H*W + 1 (extra depth token at the END).
    weight: (C, 1, 3, 3) PyTorch depthwise layout.  bias: (C,).  Returns (B, N, C)."""
    B, N, C = x.shape
    num_spatial = H * W
    assert N in (num_spatial, num_spatial + 1), "N must be H*W or H*W+1"
    assert W % 8 == 0, "kernel requires W % 8 == 0 (sublane tiling of halo blocks)"

    if row_tile is None:
        TH = _pick_row_tile(H, W, C, x.dtype.itemsize)
    else:
        TH = int(row_tile)
    assert H % TH == 0, "row_tile must divide H"
    TB = TH * W          # tokens per row tile (multiple of 8 since W % 8 == 0)
    RT = H // TH

    # Tiny host-side weight/bias reshapes (9*C and C elements; negligible).
    w9 = jnp.transpose(weight[:, 0, :, :], (1, 2, 0)).reshape(9, C)
    b2 = bias.reshape(1, C)

    def main_map(b, rt):
        return (b, rt, 0)

    def top_map(b, rt):  # image row rt*TH - 1 (clamped; zeroed in-kernel at rt == 0)
        return (b, jnp.maximum(rt * TH - 1, 0), 0)

    def bot_map(b, rt):  # image row (rt+1)*TH (clamped; zeroed in-kernel at last rt)
        return (b, jnp.minimum((rt + 1) * TH, H - 1), 0)

    grid_spec = pltpu.PrefetchScalarGridSpec(
        num_scalar_prefetch=0,
        grid=(B, RT),
        in_specs=[
            pl.BlockSpec((1, TB, C), main_map),        # row tile of x
            pl.BlockSpec((1, W, C), top_map),          # top halo row (same array)
            pl.BlockSpec((1, W, C), bot_map),          # bottom halo row (same array)
            pl.BlockSpec((9, C), lambda b, rt: (0, 0)),
            pl.BlockSpec((1, C), lambda b, rt: (0, 0)),
        ],
        out_specs=pl.BlockSpec((1, TB, C), main_map),
        scratch_shapes=[pltpu.VMEM((TB + 2 * W + 2, C), jnp.float32)],
    )

    out = pl.pallas_call(
        functools.partial(_dwconv_kernel, W=W),
        out_shape=jax.ShapeDtypeStruct((B, N, C), x.dtype),
        grid_spec=grid_spec,
        compiler_params=pltpu.CompilerParams(
            dimension_semantics=("parallel", "parallel")),
    )(x, x, x, w9, b2)

    if N == num_spatial + 1:
        # Depth-token pass-through: one-row in-place update under jit (no
        # full-tensor concatenate / extra HBM round trip).
        out = out.at[:, num_spatial:, :].set(x[:, num_spatial:, :])
    return out


def _reference(x, H, W, weight, bias):
    """Plain-JAX reference matching the PyTorch module semantics."""
    B, N, C = x.shape
    num_spatial = H * W
    if N == num_spatial + 1:
        x_spatial, depth_token = x[:, :num_spatial, :], x[:, num_spatial:, :]
    else:
        x_spatial, depth_token = x, None
    x_nchw = jnp.transpose(x_spatial, (0, 2, 1)).reshape(B, C, H, W)
    y = jax.lax.conv_general_dilated(
        x_nchw, weight, window_strides=(1, 1), padding=((1, 1), (1, 1)),
        dimension_numbers=("NCHW", "OIHW", "NCHW"), feature_group_count=C)
    y = y + bias.reshape(1, C, 1, 1)
    y = jnp.transpose(y.reshape(B, C, num_spatial), (0, 2, 1))
    if depth_token is not None:
        y = jnp.concatenate([y, depth_token], axis=1)
    return y


if __name__ == "__main__":
    key = jax.random.PRNGKey(0)
    k1, k2, k3, k4 = jax.random.split(key, 4)

    B, C, H, W = 2, 128, 16, 16          # lane-dense channel count
    N = H * W + 1                        # exercise the depth-token path

    x = jax.random.normal(k1, (B, N, C), dtype=jnp.float32)
    weight = jax.random.normal(k2, (C, 1, 3, 3), dtype=jnp.float32) * 0.1
    bias = jax.random.normal(k3, (C,), dtype=jnp.float32) * 0.1

    fwd = jax.jit(dwconv_forward, static_argnums=(1, 2),
                  static_argnames=("row_tile",))

    # Path 1: depth token present, explicit row tiling (4 row tiles per image).
    out = jax.block_until_ready(fwd(x, H, W, weight, bias, row_tile=4))
    ref = _reference(x, H, W, weight, bias)
    assert out.shape == (B, N, C)
    assert jnp.allclose(out, ref, atol=1e-4, rtol=1e-4)

    # Path 2: no depth token, automatic row-tile selection.
    x2 = jax.random.normal(k4, (B, H * W, C), dtype=jnp.float32)
    out2 = jax.block_until_ready(fwd(x2, H, W, weight, bias))
    ref2 = _reference(x2, H, W, weight, bias)
    assert out2.shape == (B, H * W, C)
    assert jnp.allclose(out2, ref2, atol=1e-4, rtol=1e-4)

    print("KERNEL_OK")
</pallas_src>

<mosaic_0001>
module attributes {stable_mosaic.version = 11 : i64} {
  func.func @_dwconv_kernel(%arg0: i32, %arg1: i32, %arg2: memref<1x64x128xf32, #tpu.memory_space<vmem>>, %arg3: memref<1x16x128xf32, #tpu.memory_space<vmem>>, %arg4: memref<1x16x128xf32, #tpu.memory_space<vmem>>, %arg5: memref<9x128xf32, #tpu.memory_space<vmem>>, %arg6: memref<1x128xf32, #tpu.memory_space<vmem>>, %arg7: memref<1x64x128xf32, #tpu.memory_space<vmem>>, %arg8: memref<98x128xf32, #tpu.memory_space<vmem>>) attributes {dimension_semantics = [#tpu.dimension_semantics<parallel>, #tpu.dimension_semantics<parallel>], iteration_bounds = array<i64: 2, 4>, scalar_prefetch = 0 : i64, scratch_operands = 1 : i64, tpu.core_type = #tpu.core_type<tc>, window_params = [{transform_indices = @transform_0, window_bounds = array<i64: 1, 64, 128>}, {transform_indices = @transform_1, window_bounds = array<i64: 1, 16, 128>}, {transform_indices = @transform_2, window_bounds = array<i64: 1, 16, 128>}, {pipeline_mode = #tpu.pipeline_mode<synchronous>, transform_indices = @transform_3, window_bounds = array<i64: 9, 128>}, {pipeline_mode = #tpu.pipeline_mode<synchronous>, transform_indices = @transform_4, window_bounds = array<i64: 1, 128>}, {transform_indices = @transform_5, window_bounds = array<i64: 1, 64, 128>}]} {
    %c0_i32 = arith.constant 0 : i32
    %0 = arith.cmpi eq, %arg1, %c0_i32 : i32
    %c0 = arith.constant 0 : index
    %c0_0 = arith.constant 0 : index
    %c0_1 = arith.constant 0 : index
    %1 = vector.load %arg3[%c0, %c0_0, %c0_1] : memref<1x16x128xf32, #tpu.memory_space<vmem>>, vector<1x16x128xf32>
    %2 = vector.shape_cast %1 : vector<1x16x128xf32> to vector<16x128xf32>
    %cst = arith.constant 0.000000e+00 : f32
    %3 = vector.broadcast %cst : f32 to vector<16x128xf32>
    %4 = arith.select %0, %3, %2 : vector<16x128xf32>
    %c3_i32 = arith.constant 3 : i32
    %5 = arith.cmpi eq, %arg1, %c3_i32 : i32
    %c0_2 = arith.constant 0 : index
    %c0_3 = arith.constant 0 : index
    %c0_4 = arith.constant 0 : index
    %6 = vector.load %arg4[%c0_2, %c0_3, %c0_4] : memref<1x16x128xf32, #tpu.memory_space<vmem>>, vector<1x16x128xf32>
    %7 = vector.shape_cast %6 : vector<1x16x128xf32> to vector<16x128xf32>
    %cst_5 = arith.constant 0.000000e+00 : f32
    %8 = vector.broadcast %cst_5 : f32 to vector<16x128xf32>
    %9 = arith.select %5, %8, %7 : vector<16x128xf32>
    %cst_6 = arith.constant 0.000000e+00 : f32
    %10 = vector.broadcast %cst_6 : f32 to vector<1x128xf32>
    %c0_7 = arith.constant 0 : index
    %c0_8 = arith.constant 0 : index
    %11 = vector.load %arg8[%c0_7, %c0_8] : memref<98x128xf32, #tpu.memory_space<vmem>>, vector<1x128xf32>
    tpu.vector_store %arg8[%c0_7, %c0_8], %10 {strides = array<i32>} : memref<98x128xf32, #tpu.memory_space<vmem>>, vector<1x128xf32>,
    %c1 = arith.constant 1 : index
    %c0_9 = arith.constant 0 : index
    %12 = vector.load %arg8[%c1, %c0_9] : memref<98x128xf32, #tpu.memory_space<vmem>>, vector<16x128xf32>
    tpu.vector_store %arg8[%c1, %c0_9], %4 {strides = array<i32>} : memref<98x128xf32, #tpu.memory_space<vmem>>, vector<16x128xf32>,
    %c0_10 = arith.constant 0 : index
    %c0_11 = arith.constant 0 : index
    %c0_12 = arith.constant 0 : index
    %13 = vector.load %arg2[%c0_10, %c0_11, %c0_12] : memref<1x64x128xf32, #tpu.memory_space<vmem>>, vector<1x64x128xf32>
    %14 = vector.shape_cast %13 : vector<1x64x128xf32> to vector<64x128xf32>
    %c17 = arith.constant 17 : index
    %c0_13 = arith.constant 0 : index
    %15 = vector.load %arg8[%c17, %c0_13] : memref<98x128xf32, #tpu.memory_space<vmem>>, vector<64x128xf32>
    tpu.vector_store %arg8[%c17, %c0_13], %14 {strides = array<i32>} : memref<98x128xf32, #tpu.memory_space<vmem>>, vector<64x128xf32>,
    %c81 = arith.constant 81 : index
    %c0_14 = arith.constant 0 : index
    %16 = vector.load %arg8[%c81, %c0_14] : memref<98x128xf32, #tpu.memory_space<vmem>>, vector<16x128xf32>
    tpu.vector_store %arg8[%c81, %c0_14], %9 {strides = array<i32>} : memref<98x128xf32, #tpu.memory_space<vmem>>, vector<16x128xf32>,
    %c97 = arith.constant 97 : index
    %c0_15 = arith.constant 0 : index
    %17 = vector.load %arg8[%c97, %c0_15] : memref<98x128xf32, #tpu.memory_space<vmem>>, vector<1x128xf32>
    tpu.vector_store %arg8[%c97, %c0_15], %10 {strides = array<i32>} : memref<98x128xf32, #tpu.memory_space<vmem>>, vector<1x128xf32>,
    %18 = tpu.iota {dimensions = array<i32: 0>} : vector<64x1xi32>
    %c16_i32 = arith.constant 16 : i32
    %c0_i32_16 = arith.constant 0 : i32
    %19 = arith.cmpi eq, %c16_i32, %c0_i32_16 : i32
    %c1_i32 = arith.constant 1 : i32
    %20 = arith.select %19, %c1_i32, %c16_i32 : i32
    %21 = vector.broadcast %20 : i32 to vector<64x1xi32>
    %22 = arith.remsi %18, %21 : vector<64x1xi32>
    %c0_i32_17 = arith.constant 0 : i32
    %23 = vector.broadcast %c0_i32_17 : i32 to vector<64x1xi32>
    %24 = arith.cmpi ne, %22, %23 : vector<64x1xi32>
    %c0_i32_18 = arith.constant 0 : i32
    %25 = vector.broadcast %c0_i32_18 : i32 to vector<64x1xi32>
    %26 = arith.cmpi slt, %22, %25 : vector<64x1xi32>
    %c0_i32_19 = arith.constant 0 : i32
    %27 = arith.cmpi slt, %20, %c0_i32_19 : i32
    %28 = vector.broadcast %27 : i1 to vector<64x1xi1>
    %29 = vector.broadcast %28 : vector<64x1xi1> to vector<64x1xi1>
    %30 = arith.xori %26, %29 : vector<64x1xi1>
    %31 = arith.andi %30, %24 : vector<64x1xi1>
    %32 = vector.broadcast %20 : i32 to vector<64x1xi32>
    %33 = arith.addi %22, %32 : vector<64x1xi32>
    %34 = arith.select %31, %33, %22 : vector<64x1xi1>, vector<64x1xi32>
    %c0_i32_20 = arith.constant 0 : i32
    %35 = vector.broadcast %c0_i32_20 : i32 to vector<64x1xi32>
    %36 = arith.cmpi ne, %34, %35 : vector<64x1xi32>
    %c15_i32 = arith.constant 15 : i32
    %37 = vector.broadcast %c15_i32 : i32 to vector<64x1xi32>
    %38 = arith.cmpi ne, %34, %37 : vector<64x1xi32>
    %c0_21 = arith.constant 0 : index
    %c0_22 = arith.constant 0 : index
    %39 = vector.load %arg8[%c0_21, %c0_22] : memref<98x128xf32, #tpu.memory_space<vmem>>, vector<64x128xf32>
    %c0_23 = arith.constant 0 : index
    %c0_24 = arith.constant 0 : index
    %40 = vector.load %arg5[%c0_23, %c0_24] : memref<9x128xf32, #tpu.memory_space<vmem>>, vector<1x128xf32>
    %41 = vector.broadcast %40 : vector<1x128xf32> to vector<64x128xf32>
    %42 = arith.mulf %39, %41 : vector<64x128xf32>
    %c16 = arith.constant 16 : index
    %c0_25 = arith.constant 0 : index
    %43 = vector.load %arg8[%c16, %c0_25] : memref<98x128xf32, #tpu.memory_space<vmem>>, vector<64x128xf32>
    %c3 = arith.constant 3 : index
    %c0_26 = arith.constant 0 : index
    %44 = vector.load %arg5[%c3, %c0_26] : memref<9x128xf32, #tpu.memory_space<vmem>>, vector<1x128xf32>
    %45 = vector.broadcast %44 : vector<1x128xf32> to vector<64x128xf32>
    %46 = arith.mulf %43, %45 : vector<64x128xf32>
    %47 = arith.addf %42, %46 : vector<64x128xf32>
    %c32 = arith.constant 32 : index
    %c0_27 = arith.constant 0 : index
    %48 = vector.load %arg8[%c32, %c0_27] : memref<98x128xf32, #tpu.memory_space<vmem>>, vector<64x128xf32>
    %c6 = arith.constant 6 : index
    %c0_28 = arith.constant 0 : index
    %49 = vector.load %arg5[%c6, %c0_28] : memref<9x128xf32, #tpu.memory_space<vmem>>, vector<1x128xf32>
    %50 = vector.broadcast %49 : vector<1x128xf32> to vector<64x128xf32>
    %51 = arith.mulf %48, %50 : vector<64x128xf32>
    %52 = arith.addf %47, %51 : vector<64x128xf32>
    %cst_29 = arith.constant 0.000000e+00 : f32
    %53 = vector.shape_cast %36 : vector<64x1xi1> to vector<64x1xi1>
    %54 = vector.broadcast %53 : vector<64x1xi1> to vector<64x128xi1>
    %55 = vector.broadcast %cst_29 : f32 to vector<64x128xf32>
    %56 = arith.select %54, %52, %55 : vector<64x128xi1>, vector<64x128xf32>
    %c1_30 = arith.constant 1 : index
    %c0_31 = arith.constant 0 : index
    %57 = vector.load %arg8[%c1_30, %c0_31] : memref<98x128xf32, #tpu.memory_space<vmem>>, vector<64x128xf32>
    %c1_32 = arith.constant 1 : index
    %c0_33 = arith.constant 0 : index
    %58 = vector.load %arg5[%c1_32, %c0_33] : memref<9x128xf32, #tpu.memory_space<vmem>>, vector<1x128xf32>
    %59 = vector.broadcast %58 : vector<1x128xf32> to vector<64x128xf32>
    %60 = arith.mulf %57, %59 : vector<64x128xf32>
    %c17_34 = arith.constant 17 : index
    %c0_35 = arith.constant 0 : index
    %61 = vector.load %arg8[%c17_34, %c0_35] : memref<98x128xf32, #tpu.memory_space<vmem>>, vector<64x128xf32>
    %c4 = arith.constant 4 : index
    %c0_36 = arith.constant 0 : index
    %62 = vector.load %arg5[%c4, %c0_36] : memref<9x128xf32, #tpu.memory_space<vmem>>, vector<1x128xf32>
    %63 = vector.broadcast %62 : vector<1x128xf32> to vector<64x128xf32>
    %64 = arith.mulf %61, %63 : vector<64x128xf32>
    %65 = arith.addf %60, %64 : vector<64x128xf32>
    %c33 = arith.constant 33 : index
    %c0_37 = arith.constant 0 : index
    %66 = vector.load %arg8[%c33, %c0_37] : memref<98x128xf32, #tpu.memory_space<vmem>>, vector<64x128xf32>
    %c7 = arith.constant 7 : index
    %c0_38 = arith.constant 0 : index
    %67 = vector.load %arg5[%c7, %c0_38] : memref<9x128xf32, #tpu.memory_space<vmem>>, vector<1x128xf32>
    %68 = vector.broadcast %67 : vector<1x128xf32> to vector<64x128xf32>
    %69 = arith.mulf %66, %68 : vector<64x128xf32>
    %70 = arith.addf %65, %69 : vector<64x128xf32>
    %71 = arith.addf %56, %70 : vector<64x128xf32>
    %c2 = arith.constant 2 : index
    %c0_39 = arith.constant 0 : index
    %72 = vector.load %arg8[%c2, %c0_39] : memref<98x128xf32, #tpu.memory_space<vmem>>, vector<64x128xf32>
    %c2_40 = arith.constant 2 : index
    %c0_41 = arith.constant 0 : index
    %73 = vector.load %arg5[%c2_40, %c0_41] : memref<9x128xf32, #tpu.memory_space<vmem>>, vector<1x128xf32>
    %74 = vector.broadcast %73 : vector<1x128xf32> to vector<64x128xf32>
    %75 = arith.mulf %72, %74 : vector<64x128xf32>
    %c18 = arith.constant 18 : index
    %c0_42 = arith.constant 0 : index
    %76 = vector.load %arg8[%c18, %c0_42] : memref<98x128xf32, #tpu.memory_space<vmem>>, vector<64x128xf32>
    %c5 = arith.constant 5 : index
    %c0_43 = arith.constant 0 : index
    %77 = vector.load %arg5[%c5, %c0_43] : memref<9x128xf32, #tpu.memory_space<vmem>>, vector<1x128xf32>
    %78 = vector.broadcast %77 : vector<1x128xf32> to vector<64x128xf32>
    %79 = arith.mulf %76, %78 : vector<64x128xf32>
    %80 = arith.addf %75, %79 : vector<64x128xf32>
    %c34 = arith.constant 34 : index
    %c0_44 = arith.constant 0 : index
    %81 = vector.load %arg8[%c34, %c0_44] : memref<98x128xf32, #tpu.memory_space<vmem>>, vector<64x128xf32>
    %c8 = arith.constant 8 : index
    %c0_45 = arith.constant 0 : index
    %82 = vector.load %arg5[%c8, %c0_45] : memref<9x128xf32, #tpu.memory_space<vmem>>, vector<1x128xf32>
    %83 = vector.broadcast %82 : vector<1x128xf32> to vector<64x128xf32>
    %84 = arith.mulf %81, %83 : vector<64x128xf32>
    %85 = arith.addf %80, %84 : vector<64x128xf32>
    %cst_46 = arith.constant 0.000000e+00 : f32
    %86 = vector.shape_cast %38 : vector<64x1xi1> to vector<64x1xi1>
    %87 = vector.broadcast %86 : vector<64x1xi1> to vector<64x128xi1>
    %88 = vector.broadcast %cst_46 : f32 to vector<64x128xf32>
    %89 = arith.select %87, %85, %88 : vector<64x128xi1>, vector<64x128xf32>
    %90 = arith.addf %71, %89 : vector<64x128xf32>
    %c0_47 = arith.constant 0 : index
    %c0_48 = arith.constant 0 : index
    %91 = vector.load %arg6[%c0_47, %c0_48] : memref<1x128xf32, #tpu.memory_space<vmem>>, vector<1x128xf32>
    %92 = vector.broadcast %91 : vector<1x128xf32> to vector<64x128xf32>
    %93 = arith.addf %90, %92 : vector<64x128xf32>
    %c0_49 = arith.constant 0 : index
    %c0_50 = arith.constant 0 : index
    %c0_51 = arith.constant 0 : index
    %94 = vector.load %arg7[%c0_49, %c0_50, %c0_51] : memref<1x64x128xf32, #tpu.memory_space<vmem>>, vector<1x64x128xf32>
    %95 = vector.shape_cast %94 : vector<1x64x128xf32> to vector<64x128xf32>
    %96 = vector.shape_cast %93 : vector<64x128xf32> to vector<1x64x128xf32>
    tpu.vector_store %arg7[%c0_49, %c0_50, %c0_51], %96 {strides = array<i32>} : memref<1x64x128xf32, #tpu.memory_space<vmem>>, vector<1x64x128xf32>,
    return
  }
  func.func @transform_0(%arg0: i32, %arg1: i32) -> (i32, i32, i32) {
    %c0_i32 = arith.constant 0 : i32
    %c0_i32_0 = arith.constant 0 : i32
    return %arg0, %arg1, %c0_i32 : i32, i32, i32
  }
  func.func @transform_1(%arg0: i32, %arg1: i32) -> (i32, i32, i32) {
    %c4_i32 = arith.constant 4 : i32
    %0 = arith.muli %arg1, %c4_i32 : i32
    %c1_i32 = arith.constant 1 : i32
    %1 = arith.subi %0, %c1_i32 : i32
    %c0_i32 = arith.constant 0 : i32
    %2 = arith.maxsi %1, %c0_i32 : i32
    %c0_i32_0 = arith.constant 0 : i32
    %c0_i32_1 = arith.constant 0 : i32
    return %arg0, %2, %c0_i32_0 : i32, i32, i32
  }
  func.func @transform_2(%arg0: i32, %arg1: i32) -> (i32, i32, i32) {
    %c1_i32 = arith.constant 1 : i32
    %0 = arith.addi %arg1, %c1_i32 : i32
    %c4_i32 = arith.constant 4 : i32
    %1 = arith.muli %0, %c4_i32 : i32
    %c15_i32 = arith.constant 15 : i32
    %2 = arith.minsi %1, %c15_i32 : i32
    %c0_i32 = arith.constant 0 : i32
    %c0_i32_0 = arith.constant 0 : i32
    return %arg0, %2, %c0_i32 : i32, i32, i32
  }
  func.func @transform_3(%arg0: i32, %arg1: i32) -> (i32, i32) {
    %c0_i32 = arith.constant 0 : i32
    %c0_i32_0 = arith.constant 0 : i32
    %c0_i32_1 = arith.constant 0 : i32
    return %c0_i32, %c0_i32_0 : i32, i32
  }
  func.func @transform_4(%arg0: i32, %arg1: i32) -> (i32, i32) {
    %c0_i32 = arith.constant 0 : i32
    %c0_i32_0 = arith.constant 0 : i32
    %c0_i32_1 = arith.constant 0 : i32
    return %c0_i32, %c0_i32_0 : i32, i32
  }
  func.func @transform_5(%arg0: i32, %arg1: i32) -> (i32, i32, i32) {
    %c0_i32 = arith.constant 0 : i32
    %c0_i32_0 = arith.constant 0 : i32
    return %arg0, %arg1, %c0_i32 : i32, i32, i32
  }
}

</mosaic_0001>

<bundles_post_ra>
// kernel: dwconv_forward.1
= control target key start
LH: loop header
LB: loop body
LE: loop exit
PB: predicated region body
PF: predicated region fallthrough
CT: control target
= control target key end

     0   :  { %s1539_s18 = smov 0   ;;  %s1541_s19 = smov 0   ;;  %s2068_s0 = inlined_call_operand.vmem [shape: f32[2,257,128], index: 0, kind: input, shape index: {}, may-alias: {0,1,2}]   ;;  %s2069_s1 = inlined_call_operand.vmem [shape: f32[2,257,128], index: 1, kind: input, shape index: {}, may-alias: {0,1,2}]   ;;  %s2070_s2 = inlined_call_operand.vmem [shape: f32[2,257,128], index: 2, kind: input, shape index: {}, may-alias: {0,1,2}]   ;;  %s2071_s3 = inlined_call_operand.vmem [shape: f32[9,128], index: 3, kind: input, shape index: {}]   ;;  %s2072_s4 = inlined_call_operand.vmem [shape: f32[1,128], index: 4, kind: input, shape index: {}]   ;;  %s2073_s5 = inlined_call_operand.vmem [shape: f32[2,257,128], index: 5, kind: output, shape index: {}]  }
   0x1   :  { %s1543_s20 = smov 0   ;;  %s1545_s21 = smov 0  }
   0x2   :  { %s1547_s22 = smov 0   ;;  %s1549_s23 = smov 0  }
   0x3   :  { %s1551_s24 = smov 0  }
   0x4 LB: > { %s24_s25 = sadd.s32 1, %s1466_s22  ;;  %s27_s26 = sadd.s32 1, %s1470_s23  ;;  %s1474_s24 = sphi %s1551_s24, %s15_s24   ;;  %s1470_s23 = sphi %s1549_s23, %s2115_s23   ;;  %s1466_s22 = sphi %s1547_s22, %s2114_s22   ;;  %s1462_s21 = sphi %s1545_s21, %s2113_s21   ;;  %s1458_s20 = sphi %s1543_s20, %s2112_s20   ;;  %s1454_s19 = sphi %s1541_s19, %s2111_s19   ;;  %s1450_s18 = sphi %s1539_s18, %s2110_s18  }
   0x5   : > { %p25_p0 = scmp.ge.s32.totalorder %s24_s25, 4  ;;  %s1197_s27 = sadd.s32 4294967295, %s1474_s24  }
   0x6   : > { %p188_p1 = scmp.ne.s32.totalorder %s1454_s19, %s1450_s18  ;;  %p189_p2 = scmp.eq.s32.totalorder %s1197_s27, 7 }
   0x7   : > { %s2117_s25 = smov (%p25_p0, %s24_s25), 0  ;;  %s2119_s26 = smov (!%p25_p0, %s27_s26), %s1470_s23 }
   0x8   : > { %s174_s28 = ssub.s32 %s1466_s22, %s2117_s25  ;;  %p29_p3 = scmp.ge.s32.totalorder %s2119_s26, 2 }
   0x9   : > { %p1207_p4 = scmp.ge.s32.totalorder %s1474_s24, 1  ;;  %p1585_p5 = por %p189_p2, %p188_p1 }
   0xa   : > { %p298_p6 = scmp.lt.s32.totalorder %s1474_s24, 9  ;;  %s2121_s26 = smov (%p29_p3, %s2119_s26), 0 }
   0xb   : > { %2079 = sst [smem:[#allocation4_spill]] %s2121_s26  ;;  %s173_s30 = ssub.s32 %s1470_s23, %s2121_s26 }
   0xc   : > { %p299_p7 = pnand %p1207_p4, %p298_p6  ;;  %s175_s6 = sor.u32 %s174_s28, %s173_s30 }
   0xd   : > { %s178_s7 = sadd.s32 1, %s1454_s19  ;;  %p176_p8 = scmp.eq.s32.totalorder %s175_s6, 0 }
   0xe   : > { %302 = sbr.rel (%p299_p7) target bundleno = 120 (0x78), region = 40 }
   0xf   : > { %s1596_s8 = scalar_select %p176_p8, %s1454_s19, %s178_s7  }
  0x13   : > { %s1599_s9 = sshll.u32 %s1458_s20, 3  ;;  %p372_p9 = scmp.lt.s32.totalorder %s1462_s21, 1  ;;  %v480_v0 = vlaneseq  ;;  %v1508_v1 = vmov 0.0   ;;  %v1621_v6 = vld [vmem:[%s2071_s3 + $0x1] ss:$0 sm:$0xff] }
  0x14   : > { %p374_p10 = scmp.lt.s32.totalorder %s1599_s9, 32  ;;  %458 = vst [vmem:[#allocation2] sm:$0x1] %v1508_v1  ;;  %479 = vst [vmem:[#allocation2 + $0x61] sm:$0x1] %v1508_v1  ;;  %s2074_s10 = sshll.u32 %s1458_s20, 2 }
  0x15   : > { %s373_s11 = scalar_select %p372_p9, %s1462_s21, 1  ;;  %v1605_v2 = vshrl.u32 %v480_v0, 7  ;;  %v1626_v7 = vld [vmem:[%s2071_s3 + $0x4] ss:$0 sm:$0xff]  ;;  %v1634_v8 = vld [vmem:[%s2071_s3 + $0x7] ss:$0 sm:$0xff] }
  0x16   : > { %s375_s12 = scalar_select %p374_p10, %s1599_s9, 32  ;;  %v1689_v34 = vld [vmem:[%s2071_s3] ss:$0 sm:$0xff]  ;;  %v1699_v39 = vld [vmem:[%s2071_s3 + $0x3] ss:$0 sm:$0xff] }
  0x17   : > { %s1608_s13 = smul.u32 33, %s373_s11  ;;  %s1212_s14 = sadd.s32 4294967295, %s2074_s10  ;;  %v485_v3 = vadd.s32 32, %v1605_v2  ;;  %v1614_v4 = vadd.s32 24, %v1605_v2  ;;  %v1638_v10 = vadd.s32 40, %v1605_v2  ;;  %v1641_v11 = vadd.s32 48, %v1605_v2 }
  0x18   : > { %p387_p11 = scmp.gt.s32.totalorder %s1212_s14, 0  ;;  %p442_p12 = scmp.eq.s32.totalorder %s1458_s20, 0  ;;  %v1644_v12 = vadd.s32 56, %v1605_v2  ;;  %v1654_v16 = vadd.s32 8, %v1605_v2  ;;  %v1669_v24 = vadd.s32 16, %v1605_v2 }
  0x19   : > { %s377_s15 = sadd.s32 %s1608_s13, %s375_s12  ;;  %v521_v5 = vand.u32 15, %v485_v3  ;;  %v514_v9 = vand.u32 15, %v1614_v4  ;;  %s2081_s10 = sshll.u32 %s1458_s20, 2  ;;  %v1713_v44 = vld [vmem:[%s2071_s3 + $0x6] ss:$0 sm:$0xff] }
  0x1a   : > { %s1210_s16 = sshll.u32 %s377_s15, 3  ;;  %s2123_s14 = smov (!%p387_p11, %s1212_s14), 0  ;;  %v1718_v45 = vld [vmem:[%s2071_s3 + $0x2] ss:$0 sm:$0xff]  ;;  %v1732_v51 = vld [vmem:[%s2071_s3 + $0x5] ss:$0 sm:$0xff] }
  0x1b   : > { %s379_s11 = scalar_lea.vmem %s2068_s0, %s1210_s16  ;;  %s1213_s26 = sshll.u32 %s2123_s14, 1  ;;  %vm1692_vm0 = vcmp.ne.s32.totalorder %v521_v5, 0  ;;  %v1737_v52 = vld [vmem:[%s2071_s3 + $0x8] ss:$0 sm:$0xff]  ;;  %vm1753_vm1 = vcmp.ne.s32.totalorder %v514_v9, 15 }
  0x1c   : > { %v462_v13 = vld [vmem:[%s379_s11 + $0x8] sm:$0xff]  ;;  %v1646_v14 = vld [vmem:[%s379_s11 + $0x10] sm:$0xff]  ;;  %v1648_v15 = vld [vmem:[%s379_s11 + $0x18] sm:$0xff]  ;;  %p396_p13 = scmp.lt.s32.totalorder %s1213_s26, 32  ;;  %s1684_s12 = sadd.s32 4, %s2081_s10 }
  0x1d   : > { %470 = vst [vmem:[#allocation2 + $0x19] sm:$0xff] %v462_v13  ;;  %471 = vst [vmem:[#allocation2 + $0x21] sm:$0xff] %v1646_v14  ;;  %v1659_v18 = vld [vmem:[%s379_s11 + $0x20] sm:$0xff]  ;;  %v466_v20 = vld [vmem:[%s379_s11 + $0x28] sm:$0xff]  ;;  %v709_v21 = vmul.f32 %v1621_v6, %v1646_v14  ;;  %v708_v22 = vmul.f32 %v1621_v6, %v462_v13  ;;  %v723_v23 = vmul.f32 %v1626_v7, %v1648_v15  ;;  %s1708_s27 = scalar_select %p442_p12, 0, 255 }
  0x1e   : > { %472 = vst [vmem:[#allocation2 + $0x29] sm:$0xff] %v1648_v15  ;;  %2080 = vst [vmem:[#allocation5_spill] sm:$0xff] %v1659_v18  ;;  %v1661_v19 = vld [vmem:[%s379_s11] sm:$0xff]  ;;  %v467_v25 = vld [vmem:[%s379_s11 + $0x30] sm:$0xff]  ;;  %v724_v27 = vmul.f32 %v1626_v7, %v1659_v18  ;;  %v746_v28 = vmul.f32 %v1634_v8, %v466_v20  ;;  %v710_v29 = vmul.f32 %v1621_v6, %v1648_v15  ;;  %s2125_s26 = smov (!%p396_p13, %s1213_s26), 32  ;;  %p413_p0 = scmp.lt.s32.totalorder %s1684_s12, 15 }
  0x1f   : > { %473 = vst [vmem:[#allocation2 + $0x31] sm:$0xff] %v1659_v18  ;;  %469 = vst [vmem:[#allocation2 + $0x11] sm:$0xff] %v1661_v19  ;;  %v468_v26 = vld [vmem:[%s379_s11 + $0x38] sm:$0xff]  ;;  %v725_v30 = vmul.f32 %v1626_v7, %v466_v20  ;;  %v747_v31 = vmul.f32 %v1634_v8, %v467_v25  ;;  %v731_v32 = vadd.f32 %v723_v23, %v708_v22  ;;  %s399_s11 = sadd.s32 %s1608_s13, %s2125_s26  ;;  %p450_p1 = scmp.eq.s32.totalorder %s1458_s20, 3 }
  0x20   : > { %474 = vst [vmem:[#allocation2 + $0x39] sm:$0xff] %v466_v20  ;;  %475 = vst [vmem:[#allocation2 + $0x41] sm:$0xff] %v467_v25  ;;  %v748_v33 = vmul.f32 %v1634_v8, %v468_v26  ;;  %v732_v35 = vadd.f32 %v724_v27, %v709_v21  ;;  %v711_v41 = vmul.f32 %v1621_v6, %v1659_v18  ;;  %s1214_s26 = sshll.u32 %s399_s11, 3  ;;  %s364_s6 = sand.u32 1, %s1450_s18  }
  0x21   : > { %476 = vst [vmem:[#allocation2 + $0x49] sm:$0xff] %v468_v26  ;;  %v733_v37 = vadd.f32 %v725_v30, %v710_v29  ;;  %v726_v42 = vmul.f32 %v1626_v7, %v467_v25  ;;  %v1720_v46 = vadd.f32 %v746_v28, %v731_v32  ;;  %v712_v47 = vmul.f32 %v1621_v6, %v466_v20  ;;  %s401_s30 = scalar_lea.vmem %s2069_s1, %s1214_s26  ;;  %s2127_s12 = smov (!%p413_p0, %s1684_s12), 15 }
  0x22   : > { %v727_v48 = vmul.f32 %v1626_v7, %v468_v26  ;;  %v1727_v50 = vadd.f32 %v747_v31, %v732_v35  ;;  %v1744_v55 = vmul.f32 %v1626_v7, %v462_v13  ;;  %v1763_v61 = vmul.f32 %v1634_v8, %v1648_v15  ;;  %v1792_v15 = vld [vmem:[%s401_s30] sm:%s1708_s27]  ;;  %v1381_v35 = vld [vmem:[%s401_s30 + $0x8] sm:%s1708_s27]  ;;  %s1216_s7 = sshll.u32 %s2127_s12, 1  ;;  %s1828_s27 = sshll.u32 %s364_s6, 6 }
  0x23   : > { %v1739_v53 = vadd.f32 %v748_v33, %v733_v37  ;;  %v1741_v54 = vadd.f32 %v726_v42, %v711_v41  ;;  %v1767_v62 = vmul.f32 %v1626_v7, %v1661_v19  ;;  %v1771_v63 = vmul.f32 %v1634_v8, %v1646_v14  ;;  %459 = vst [vmem:[#allocation2 + $0x1] sm:$0xff] %v1792_v15  ;;  %p422_p2 = scmp.lt.s32.totalorder %s1216_s7, 32  ;;  %s1897_s16 = scalar_lea.vmem [#allocation3], %s1828_s27  }
  0x24   : > { %v1747_v56 = vld [vmem:[#allocation2 + $0x20] sm:$0xff]  ;;  %v1759_v60 = vadd.f32 %v727_v48, %v712_v47  ;;  %460 = vst [vmem:[#allocation2 + $0x9] sm:$0xff] %v1381_v35  ;;  %s1839_s18 = scalar_select %p450_p1, 0, 255 }
  0x25   : > { %v1749_v57 = vld [vmem:[#allocation2 + $0x22] sm:$0xff]  ;;  %v618_v1 = vmul.f32 %v1689_v34, %v1747_v56  ;;  %v1810_v30 = vld [vmem:[#allocation2 + $0x1a] sm:$0xff]  ;;  %s2129_s7 = smov (!%p422_p2, %s1216_s7), 32  ;;  %s903_s26 = ssub.s32 (%p1585_p5), 33, %s1599_s9 }
  0x26   : > { %v1757_v59 = vld [vmem:[#allocation2 + $0x28] sm:$0xff]  ;;  %v1777_v0 = vld [vmem:[#allocation2 + $0x30] sm:$0xff]  ;;  %v784_v4 = vmul.f32 %v1718_v45, %v1749_v57  ;;  %v1785_v5 = vld [vmem:[#allocation2 + $0x18] sm:$0xff]  ;;  %v783_v40 = vmul.f32 %v1718_v45, %v1810_v30  ;;  %s425_s12 = sadd.s32 %s1608_s13, %s2129_s7  ;;  %s1254_s17 = smul.u32 (%p1585_p5), 33, %s1462_s21 }
  0x27   : > { %v1781_v3 = vld [vmem:[#allocation2 + $0x32] sm:$0xff]  ;;  %v632_v9 = vmul.f32 %v1699_v39, %v1757_v59  ;;  %v619_v13 = vmul.f32 %v1689_v34, %v1757_v59  ;;  %v622_v20 = vld [vmem:[#allocation2 + $0x40] sm:$0xff]  ;;  %v633_v21 = vmul.f32 %v1699_v39, %v1777_v0  ;;  %v617_v25 = vmul.f32 %v1689_v34, %v1785_v5  ;;  %v1812_v31 = vld [vmem:[#allocation2 + $0x2a] sm:$0xff]  ;;  %s1217_s20 = sshll.u32 %s425_s12, 3  ;;  %p904_p3 = scmp.lt.s32.totalorder (%p1585_p5), %s903_s26, 8 }
  0x28   : > { %2086 = vst [vmem:[#allocation6_spill] sm:$0xff] %v1781_v3  ;;  %v799_v22 = vmul.f32 %v1732_v51, %v1781_v3  ;;  %v815_v23 = vld [vmem:[#allocation2 + $0x42] sm:$0xff]  ;;  %v620_v26 = vmul.f32 %v1689_v34, %v1777_v0  ;;  %v656_v27 = vmul.f32 %v1713_v44, %v622_v20  ;;  %v608_v29 = vld [vmem:[#allocation2 + $0x38] sm:$0xff]  ;;  %v635_v32 = vmul.f32 %v1699_v39, %v622_v20  ;;  %s427_s15 = scalar_lea.vmem %s2070_s2, %s1217_s20  ;;  %s909_s28 = sadd.s32 (%p1585_p5), %s1254_s17, %s1599_s9 }
  0x29   : > { %v828_v28 = vmul.f32 %v1737_v52, %v815_v23  ;;  %v786_v33 = vmul.f32 %v1718_v45, %v1781_v3  ;;  %v641_v37 = vadd.f32 %v633_v21, %v618_v1  ;;  %v640_v42 = vadd.f32 %v632_v9, %v617_v25  ;;  %v814_v48 = vld [vmem:[#allocation2 + $0x3a] sm:$0xff]  ;;  %v623_v43 = vld [vmem:[#allocation2 + $0x48] sm:$0xff]  ;;  %s1232_s30 = sshll.u32 (%p1585_p5), %s909_s28, 3 }
  0x2a   : > { %v807_v41 = vadd.f32 %v799_v22, %v784_v4  ;;  %v655_v47 = vmul.f32 %v1713_v44, %v608_v29  ;;  %v798_v20 = vmul.f32 %v1732_v51, %v1812_v31  ;;  %v827_v36 = vmul.f32 %v1737_v52, %v814_v48 }
  0x2b   : > { %v634_v1 = vmul.f32 %v1699_v39, %v608_v29  ;;  %v664_v4 = vadd.f32 %v656_v27, %v641_v37  ;;  %v657_v17 = vmul.f32 %v1713_v44, %v623_v43  ;;  %v785_v18 = vmul.f32 %v1718_v45, %v1812_v31 }
  0x2c   : > { %v836_v9 = vadd.f32 %v828_v28, %v807_v41  ;;  %v663_v21 = vadd.f32 %v655_v47, %v640_v42  ;;  %v806_v22 = vadd.f32 %v798_v20, %v783_v40  ;;  %v800_v27 = vmul.f32 %v1732_v51, %v814_v48  ;;  %v1384_v20 = vld [vmem:[%s427_s15] sm:%s1839_s18] }
  0x2d   : > { %v642_v25 = vadd.f32 %v634_v1, %v619_v13  ;;  %v688_v49 = vsel %vm1692_vm0, %v664_v4, 0.0  ;;  %v1842_v37 = vadd.f32 %v635_v32, %v620_v26  ;;  %v2087_v41 = vand.u32 15, %v1654_v16  ;;  %477 = vst [vmem:[#allocation2 + $0x51] sm:$0xff] %v1384_v20 }
  0x2e   : > { %v762_v3 = vadd.f32 %v1720_v46, %v663_v21  ;;  %v763_v28 = vadd.f32 %v1727_v50, %v688_v49  ;;  %v835_v40 = vadd.f32 %v827_v36, %v806_v22  ;;  %v1854_v46 = vld [vmem:[%s2072_s4] ss:$0 sm:$0xff]  ;;  %v1856_v42 = vadd.f32 %v800_v27, %v785_v18  ;;  %v1387_v27 = vld [vmem:[%s427_s15 + $0x8] sm:%s1839_s18]  ;;  %s2006_s18 = scalar_lea.vmem (%p1585_p5), %s2073_s5, %s1232_s30  }
  0x2f   : > { %v665_v13 = vadd.f32 %v657_v17, %v642_v25  ;;  %vm1846_vm2 = vcmp.ne.s32.totalorder %v2087_v41, 15  ;;  %v801_v49 = vmul.f32 %v1732_v51, %v815_v23  ;;  %v621_v17 = vmul.f32 %v1689_v34, %v608_v29  ;;  %478 = vst [vmem:[#allocation2 + $0x59] sm:$0xff] %v1387_v27 }
  0x30   : > { %v636_v36 = vmul.f32 %v1699_v39, %v623_v43  ;;  %v868_v16 = vadd.f32 %v836_v9, %v763_v28  ;;  %v859_v50 = vsel %vm1753_vm1, %v835_v40, 0.0  ;;  %v1867_v32 = vmul.f32 %v1718_v45, %v814_v48  ;;  %v601_v48 = vld [vmem:[#allocation2] sm:$0xff]  ;;  %v603_v9 = vld [vmem:[#allocation2 + $0x10] sm:$0xff] }
  0x31   : > { %v1864_v26 = vadd.f32 %v1739_v53, %v665_v13  ;;  %v2090_v18 = vand.u32 15, %v1605_v2  ;;  %v867_v43 = vadd.f32 %v859_v50, %v762_v3  ;;  %v1878_v29 = vadd.f32 %v801_v49, %v786_v33  ;;  %v602_v53 = vld [vmem:[#allocation2 + $0x8] sm:$0xff] }
  0x32   : > { %v1880_v58 = vadd.f32 %v636_v36, %v621_v17  ;;  %v630_v47 = vmul.f32 %v1699_v39, %v1785_v5  ;;  %v768_v2 = vld [vmem:[#allocation2 + $0xa] sm:$0xff]  ;;  %v883_v1 = vadd.f32 %v1854_v46, %v868_v16  ;;  %v615_v4 = vmul.f32 %v1689_v34, %v602_v53  ;;  %v767_v17 = vld [vmem:[#allocation2 + $0x2] sm:$0xff] }
  0x33   : > { %vm1871_vm3 = vcmp.ne.s32.totalorder %v2090_v18, 0  ;;  %v653_v3 = vmul.f32 %v1713_v44, %v1757_v59  ;;  %v706_v33 = vmul.f32 %v1381_v35, %v1621_v6  ;;  %v882_v21 = vadd.f32 %v1854_v46, %v867_v43 }
  0x34   : > { %v749_v22 = vmul.f32 %v1384_v20, %v1634_v8  ;;  %v781_v5 = vmul.f32 %v1718_v45, %v768_v2  ;;  %v796_v25 = vmul.f32 %v1732_v51, %v1810_v30  ;;  %891 = vst [vmem:[%s1897_s16 + $0x20] sm:$0xff] %v883_v1  ;;  %v2093_v59 = vand.u32 15, %v1638_v10 }
  0x35   : > { %v2096_v28 = vand.u32 15, %v1641_v11  ;;  %v638_v13 = vadd.f32 %v630_v47, %v615_v4  ;;  %v729_v30 = vadd.f32 %v1744_v55, %v706_v33  ;;  %v825_v41 = vmul.f32 %v1737_v52, %v1812_v31  ;;  %890 = vst [vmem:[%s1897_s16 + $0x18] sm:$0xff] %v882_v21  ;;  %v816_v21 = vld [vmem:[#allocation2 + $0x4a] sm:$0xff] }
  0x36   : > { %vm1902_vm4 = vcmp.ne.s32.totalorder %v2093_v59, 15  ;;  %v614_v49 = vmul.f32 %v1689_v34, %v601_v48  ;;  %v757_v10 = vadd.f32 %v749_v22, %v1741_v54  ;;  %v750_v36 = vmul.f32 %v1387_v27, %v1634_v8  ;;  %v769_v48 = vld [vmem:[#allocation2 + $0x12] sm:$0xff] }
  0x37   : > { %vm1908_vm5 = vcmp.ne.s32.totalorder %v2096_v28, 0  ;;  %v804_v11 = vadd.f32 %v796_v25, %v781_v5  ;;  %v629_v16 = vmul.f32 %v1699_v39, %v603_v9  ;;  %v661_v50 = vadd.f32 %v653_v3, %v638_v13  ;;  %v645_v22 = vld [vmem:[#allocation2 + $0x50] sm:$0xff]  ;;  %v818_v13 = vld [vmem:[#allocation2 + $0x5a] sm:$0xff] }
  0x38   : > { %v752_v18 = vadd.f32 %v1763_v61, %v729_v30  ;;  %v652_v55 = vmul.f32 %v1713_v44, %v1747_v56  ;;  %v705_v31 = vmul.f32 %v1792_v15, %v1621_v6  ;;  %v2099_v43 = vand.u32 15, %v1644_v12 }
  0x39   : > { %v758_v54 = vadd.f32 %v750_v36, %v1759_v60  ;;  %v833_v47 = vadd.f32 %v825_v41, %v804_v11  ;;  %v637_v2 = vadd.f32 %v629_v16, %v614_v49  ;;  %v780_v20 = vmul.f32 %v1718_v45, %v767_v17 }
  0x3a   : > { %vm1927_vm6 = vcmp.ne.s32.totalorder %v2099_v43, 15  ;;  %v760_v61 = vadd.f32 %v752_v18, %v661_v50  ;;  %v728_v1 = vadd.f32 %v1767_v62, %v705_v31  ;;  %v795_v4 = vmul.f32 %v1732_v51, %v769_v48 }
  0x3b   : > { %v824_v15 = vmul.f32 %v1737_v52, %v1749_v57  ;;  %v857_v12 = vsel %vm1846_vm2, %v833_v47, 0.0  ;;  %v660_v3 = vadd.f32 %v652_v55, %v637_v2  ;;  %v507_v33 = vand.u32 15, %v1669_v24 }
  0x3c   : > { %v616_v60 = vmul.f32 %v1689_v34, %v603_v9  ;;  %v865_v5 = vadd.f32 %v857_v12, %v760_v61  ;;  %v751_v25 = vadd.f32 %v1771_v63, %v728_v1  ;;  %v803_v27 = vadd.f32 %v795_v4, %v780_v20  ;;  %v817_v34 = vld [vmem:[#allocation2 + $0x52] sm:$0xff] }
  0x3d   : > { %v631_v62 = vmul.f32 %v1699_v39, %v1747_v56  ;;  %v829_v59 = vmul.f32 %v1737_v52, %v816_v21  ;;  %v658_v28 = vmul.f32 %v1713_v44, %v645_v22  ;;  %v802_v38 = vmul.f32 %v1732_v51, %v816_v21  ;;  %v646_v9 = vld [vmem:[#allocation2 + $0x58] sm:$0xff] }
  0x3e   : > { %v684_v24 = vsel %vm1871_vm3, %v660_v3, 0.0  ;;  %v880_v30 = vadd.f32 %v1854_v46, %v865_v5  ;;  %v832_v41 = vadd.f32 %v824_v15, %v803_v27  ;;  %vm1950_vm7 = vcmp.ne.s32.totalorder %v507_v33, 0 }
  0x3f   : > { %v759_v63 = vadd.f32 %v751_v25, %v684_v24  ;;  %v837_v39 = vadd.f32 %v829_v59, %v1856_v42  ;;  %v666_v56 = vadd.f32 %v658_v28, %v1842_v37  ;;  %v830_v17 = vmul.f32 %v1737_v52, %v817_v34 }
  0x40   : > { %v659_v23 = vmul.f32 %v1713_v44, %v646_v9  ;;  %v810_v36 = vadd.f32 %v802_v38, %v1867_v32  ;;  %v831_v11 = vmul.f32 %v1737_v52, %v818_v13  ;;  %888 = vst [vmem:[%s1897_s16 + $0x8] sm:$0xff] %v880_v30  ;;  %v639_v50 = vadd.f32 %v631_v62, %v616_v60 }
  0x41   : > { %v864_v16 = vadd.f32 %v832_v41, %v759_v63  ;;  %v861_v18 = vsel %vm1902_vm4, %v837_v39, 0.0  ;;  %v690_v42 = vsel %vm1908_vm5, %v666_v56, 0.0  ;;  %v838_v37 = vadd.f32 %v830_v17, %v1878_v29 }
  0x42   : > { %v667_v55 = vadd.f32 %v659_v23, %v1880_v58  ;;  %v869_v31 = vadd.f32 %v861_v18, %v1864_v26  ;;  %v765_v43 = vadd.f32 %v757_v10, %v690_v42  ;;  %v839_v32 = vadd.f32 %v831_v11, %v810_v36  ;;  %v2104_v10 = vld [vmem:[#allocation5_spill] sm:$0xff] }
  0x43   : > { %v879_v47 = vadd.f32 %v1854_v46, %v864_v16  ;;  %v654_v35 = vmul.f32 %v1713_v44, %v1777_v0  ;;  %v707_v20 = vmul.f32 %v1621_v6, %v1661_v19  ;;  %v722_v40 = vmul.f32 %v1626_v7, %v1646_v14  ;;  %v2105_v19 = vld [vmem:[#allocation6_spill] sm:$0xff] }
  0x44   : > { %v766_v2 = vadd.f32 %v758_v54, %v667_v55  ;;  %v884_v29 = vadd.f32 %v1854_v46, %v869_v31  ;;  %v870_v58 = vadd.f32 %v838_v37, %v765_v43  ;;  %v863_v26 = vsel %vm1927_vm6, %v839_v32, 0.0 }
  0x45   : > { %887 = vst [vmem:[%s1897_s16] sm:$0xff] %v879_v47  ;;  %v745_v54 = vmul.f32 %v1634_v8, %v2104_v10  ;;  %v662_v44 = vadd.f32 %v654_v35, %v639_v50  ;;  %v730_v0 = vadd.f32 %v722_v40, %v707_v20  ;;  %v782_v6 = vmul.f32 %v1718_v45, %v769_v48 }
  0x46   : > { %v871_v61 = vadd.f32 %v863_v26, %v766_v2  ;;  %892 = vst [vmem:[%s1897_s16 + $0x28] sm:$0xff] %v884_v29  ;;  %v885_v7 = vadd.f32 %v1854_v46, %v870_v58  ;;  %v797_v14 = vmul.f32 %v1732_v51, %v1749_v57  ;;  %v826_v53 = vmul.f32 %v1737_v52, %v2105_v19 }
  0x47   : > { %v686_v8 = vsel %vm1950_vm7, %v662_v44, 0.0  ;;  %v753_v4 = vadd.f32 %v745_v54, %v730_v0 }
  0x48   : > { %v886_v1 = vadd.f32 %v1854_v46, %v871_v61  ;;  %893 = vst [vmem:[%s1897_s16 + $0x30] sm:$0xff] %v885_v7  ;;  %v805_v15 = vadd.f32 %v797_v14, %v782_v6 }
  0x49   : > { %v761_v12 = vadd.f32 %v753_v4, %v686_v8 }
  0x4a   : > { %894 = vst [vmem:[%s1897_s16 + $0x38] sm:$0xff] %v886_v1  ;;  %v834_v45 = vadd.f32 %v826_v53, %v805_v15 }
  0x4c   : > { %v866_v48 = vadd.f32 %v834_v45, %v761_v12  ;;  %901 = sbr.rel (!%p1585_p5) target bundleno = 120 (0x78), region = 44 }
  0x4e   : > { %v881_v3 = vadd.f32 %v1854_v46, %v866_v48 }
  0x50   : > { %889 = vst [vmem:[%s1897_s16 + $0x10] sm:$0xff] %v881_v3 }
  0x51   : > { %s2131_s26 = smov (!%p904_p3, %s903_s26), 8 }
  0x52   : > { %s1230_s6 = sshll.u32 %s2131_s26, 7 }
  0x53   : > { %p1233_p4 = scmp.eq.s32.totalorder %s1230_s6, 0 }
  0x54   : > { %s2009_s29 = sshrl.u32 (!%p1233_p4), %s2131_s26, 3 }
  0x55   : > { %914 = sbr.rel (%p1233_p4) target bundleno = 120 (0x78), region = 48  ;;  %p1234_p5 = scmp.le.s32.totalorder (!%p1233_p4), %s2009_s29, 0 }
  0x5a   : > { %1130 = sbr.rel (%p1234_p5) target bundleno = 103 (0x67), region = 130  ;;  %s2106_s21 = smov (!%p1234_p5), %s2006_s18 }
  0x5b   : > { %s2107_s9 = smov (!%p1234_p5), %s1897_s16  ;;  %s2018_s12 = smov (!%p1234_p5), 0  }
  0x5c   : > { %s2020_s11 = smov (!%p1234_p5), 0  }
  0x5f LB: >> { %v991_v51 = vld [vmem:[%s1482_s9] sm:$0xff]  ;;  %v993_v52 = vld [vmem:[%s1482_s9 + $0x8] sm:$0xff]  ;;  %v995_v57 = vld [vmem:[%s1482_s9 + $0x10] sm:$0xff]  ;;  %s1007_s10 = sadd.s32 1, %s1486_s12  ;;  %s985_s11 = sadd.s32 1, %s1490_s11   ;;  %s1490_s11 = sphi %s2020_s11, %s985_s11   ;;  %s1486_s12 = sphi %s2018_s12, %s2108_s12   ;;  %s1482_s9 = sphi %s2107_s9, %s1012_s9   ;;  %s1478_s21 = sphi %s2106_s21, %s1013_s21  }
  0x60   : >> { %992 = vst [vmem:[%s1478_s21] sm:$0xff] %v991_v51  ;;  %994 = vst [vmem:[%s1478_s21 + $0x8] sm:$0xff] %v993_v52  ;;  %v997_v46 = vld [vmem:[%s1482_s9 + $0x18] sm:$0xff]  ;;  %v999_v33 = vld [vmem:[%s1482_s9 + $0x20] sm:$0xff]  ;;  %p1008_p6 = scmp.ge.s32.totalorder %s1007_s10, %s2009_s29  ;;  %p984_p7 = scmp.ge.s32.totalorder %s985_s11, %s2009_s29 }
  0x61   : >> { %996 = vst [vmem:[%s1478_s21 + $0x10] sm:$0xff] %v995_v57  ;;  %v1001_v60 = vld [vmem:[%s1482_s9 + $0x28] sm:$0xff]  ;;  %998 = vst [vmem:[%s1478_s21 + $0x18] sm:$0xff] %v997_v46  ;;  %v1003_v21 = vld [vmem:[%s1482_s9 + $0x30] sm:$0xff] }
  0x62   : >> { %1000 = vst [vmem:[%s1478_s21 + $0x20] sm:$0xff] %v999_v33  ;;  %1002 = vst [vmem:[%s1478_s21 + $0x28] sm:$0xff] %v1001_v60  ;;  %v1005_v22 = vld [vmem:[%s1482_s9 + $0x38] sm:$0xff]  ;;  %s2133_s10 = smov (%p1008_p6, %s1007_s10), 0  ;;  %987 = sbr.rel (!%p984_p7) target bundleno = 95 (0x5f), region = 136 }
  0x63   : >> { %1004 = vst [vmem:[%s1478_s21 + $0x30] sm:$0xff] %v1003_v21  ;;  %1006 = vst [vmem:[%s1478_s21 + $0x38] sm:$0xff] %v1005_v22  ;;  %s1235_s20 = sshll.u32 %s2133_s10, 6  ;;  %s2108_s12 = smov %s2133_s10 }
  0x64   : >> { %s1012_s9 = scalar_lea.vmem %s1897_s16, %s1235_s20 [#allocation3]   ;;  %s1013_s21 = scalar_lea.vmem %s2006_s18, %s1235_s20  }
  0x67 PF: > { %s2039_s13 = sand.u32 7, %s2131_s26   ;;  %s1251_s14 = sshll.u32 %s2009_s29, 6 }
  0x68   : > { %s1018_s15 = scalar_lea.vmem %s1897_s16, %s1251_s14 [#allocation3]   ;;  %s1020_s17 = scalar_lea.vmem %s2006_s18, %s1251_s14  }
  0x69   : > { %p1240_p8 = scmp.le.s32.totalorder %s2039_s13, 0 }
  0x6a   : > { %s1492_s28 = smov (!%p1240_p8), %s1020_s17   ;;  %s1496_s30 = smov (!%p1240_p8), %s1018_s15  }
  0x6b   : > { %1144 = sbr.rel (%p1240_p8) target bundleno = 120 (0x78), region = 141  ;;  %s1500_s6 = smov (!%p1240_p8), 0  }
  0x6c   : > { %s1504_s7 = smov (!%p1240_p8), 0  }
  0x70 LB: >> { %v1030_v5 = vld [vmem:[%s1498_s30] sm:$0xff]  ;;  %s1032_s26 = sadd.s32 1, %s1502_s6  ;;  %s1024_s7 = sadd.s32 1, %s1506_s7   ;;  %s1506_s7 = sphi %s1504_s7, %s1024_s7   ;;  %s1502_s6 = sphi %s1500_s6, %s1501_s6   ;;  %s1498_s30 = sphi %s1496_s30, %s1037_s30   ;;  %s1494_s28 = sphi %s1492_s28, %s1038_s28  }
  0x71   : >> { %1031 = vst [vmem:[%s1494_s28] sm:$0xff] %v1030_v5  ;;  %p1033_p9 = scmp.ge.s32.totalorder %s1032_s26, %s2039_s13  ;;  %p1023_p10 = scmp.ge.s32.totalorder %s1024_s7, %s2039_s13 }
  0x73   : >> { %s2135_s26 = smov (%p1033_p9, %s1032_s26), 0  ;;  %1026 = sbr.rel (!%p1023_p10) target bundleno = 112 (0x70), region = 147 }
  0x74   : >> { %s1241_s16 = sshll.u32 %s2135_s26, 3  ;;  %s1501_s6 = smov %s2135_s26  }
  0x75   : >> { %s1037_s30 = scalar_lea.vmem %s1018_s15, %s1241_s16 [#allocation3]   ;;  %s1038_s28 = scalar_lea.vmem %s1020_s17, %s1241_s16  }
  0x78 PF: > { %s15_s24 = sadd.s32 1, %s1474_s24   ;;  %s2109_s27 = sld [smem:[#allocation4_spill]] }
  0x79   : > { %p12_p11 = scmp.ge.s32.totalorder %s15_s24, 10   ;;  %s2110_s18 = smov %s1454_s19 }
  0x7a   : > { %s2111_s19 = smov %s1596_s8  ;;  %s2112_s20 = smov %s1466_s22 }
  0x7b   : > { %s2113_s21 = smov %s1470_s23  ;;  %s2114_s22 = smov %s2117_s25 }
  0x7c   :  { %14 = sbr.rel (!%p12_p11) target bundleno = 4 (0x4), region = 158 }
  0x7e   : > { %s2115_s23 = smov %s2109_s27 }

</bundles_post_ra>
